<compile_context>
chip_gen: v6e
topology: v6e:2x2x1
jax: 0.10.0
libtpu: 0.0.40
codegen_flags: <defaults>
</compile_context>

<pallas_src>
import functools

import jax
import jax.numpy as jnp
from jax.experimental import pallas as pl
from jax.experimental.pallas import tpu as pltpu


def _round_up(x, m):
    return ((x + m - 1) // m) * m


def _is_pow2(n):
    return n > 0 and (n & (n - 1)) == 0


_VMEM_LIMIT = 48 * 1024 * 1024  # fits v7x's 64 MiB VMEM with headroom


# ----------------------------- Pallas kernels ------------------------------

def _gemm_bias_act_kernel(x_ref, w_ref, b_ref, o_ref, acc_ref, *, silu, nk):
    """Tiled GEMM with K-accumulation; bias (+SiLU) epilogue on the last K step."""
    k = pl.program_id(2)

    @pl.when(k == 0)
    def _():
        acc_ref[...] = jnp.zeros_like(acc_ref)

    acc_ref[...] += jnp.dot(x_ref[...], w_ref[...],
                            preferred_element_type=jnp.float32)

    @pl.when(k == nk - 1)
    def _():
        acc = acc_ref[...] + b_ref[...]          # (tm, tn) + (1, tn), f32
        if silu:
            acc = acc * jax.nn.sigmoid(acc)      # SiLU / swish on f32 acc
        o_ref[...] = acc.astype(o_ref.dtype)


def gemm_bias_act(x, w, b, *, silu, out_dtype=jnp.float32,
                  tm=512, tn=256, tk=512):
    """y = act(x @ w + b): bf16 operands, f32 accumulation, tiled M/N/K grid."""
    M, K = x.shape
    K2, N = w.shape
    assert K == K2
    tm = min(tm, _round_up(M, 16))      # 16: bf16 sublane packing
    tn = min(tn, _round_up(N, 128))     # lane-dense output channels
    tk = min(tk, _round_up(K, 128))
    Mp, Kp, Np = _round_up(M, tm), _round_up(K, tk), _round_up(N, tn)

    xp = jnp.pad(x.astype(jnp.bfloat16), ((0, Mp - M), (0, Kp - K)))
    wp = jnp.pad(w.astype(jnp.bfloat16), ((0, Kp - K), (0, Np - N)))
    bp = jnp.pad(b.astype(jnp.float32), (0, Np - N)).reshape(1, Np)
    nk = Kp // tk

    kern = functools.partial(_gemm_bias_act_kernel, silu=silu, nk=nk)
    out = pl.pallas_call(
        kern,
        out_shape=jax.ShapeDtypeStruct((Mp, Np), out_dtype),
        grid=(Mp // tm, Np // tn, nk),
        in_specs=[
            pl.BlockSpec((tm, tk), lambda i, j, k: (i, k)),
            pl.BlockSpec((tk, tn), lambda i, j, k: (k, j)),
            pl.BlockSpec((1, tn), lambda i, j, k: (0, j)),
        ],
        out_specs=pl.BlockSpec((tm, tn), lambda i, j, k: (i, j)),
        scratch_shapes=[pltpu.VMEM((tm, tn), jnp.float32)],
        compiler_params=pltpu.CompilerParams(
            dimension_semantics=("parallel", "parallel", "arbitrary"),
            vmem_limit_bytes=_VMEM_LIMIT,
        ),
        cost_estimate=pl.CostEstimate(
            flops=2 * M * K * N,
            transcendentals=M * N if silu else 0,
            bytes_accessed=(M * K * 2 + K * N * 2 + N * 4
                            + M * N * jnp.dtype(out_dtype).itemsize),
        ),
    )(xp, wp, bp)
    return out[:M, :N]


def _head_decode_kernel(x_ref, w_ref, b_ref, o_ref, acc_ref, *,
                        nk, tm, np_, hw, wo, stride):
    """1x1 head GEMM fused with the YOLO decode as its epilogue."""
    k = pl.program_id(1)
    # Hoisted out of the pl.when body: program_id must not be bound inside a
    # lax.cond branch (it has no lowering rule there and crashes interpret/CPU).
    row0 = pl.program_id(0) * tm

    @pl.when(k == 0)
    def _():
        acc_ref[...] = jnp.zeros_like(acc_ref)

    acc_ref[...] += jnp.dot(x_ref[...], w_ref[...],
                            preferred_element_type=jnp.float32)

    @pl.when(k == nk - 1)
    def _():
        raw = acc_ref[...] + b_ref[...]
        s = jax.nn.sigmoid(raw)                                   # (tm, np_)

        # Detection-grid offsets generated in-kernel (no HBM grid tensor).
        row = jax.lax.broadcasted_iota(jnp.int32, (tm, 1), 0) + row0
        if _is_pow2(hw) and _is_pow2(wo):
            cell = jnp.bitwise_and(row, hw - 1)
            gx = jnp.bitwise_and(cell, wo - 1).astype(jnp.float32)
            gy = (cell >> (wo.bit_length() - 1)).astype(jnp.float32)
        else:  # f32 fallback (not hit at the toy sizes)
            rowf = row.astype(jnp.float32)
            cellf = rowf - jnp.floor(rowf * (1.0 / hw) + 1e-6) * hw
            gy = jnp.floor(cellf * (1.0 / wo) + 1e-6)
            gx = cellf - gy * wo

        # Build the full-width tile with lane-index selects and do ONE
        # unmasked, lane-dense store (no narrow masked slab stores).
        lane = jax.lax.broadcasted_iota(jnp.int32, (tm, np_), 1)
        g = jnp.where(lane == 0, gx, jnp.where(lane == 1, gy, 0.0))
        xy = (2.0 * s - 0.5 + g) * stride                         # lanes 0,1
        wh = (4.0 * s * s) * stride                               # lanes 2,3
        out = jnp.where(lane < 2, xy, jnp.where(lane < 4, wh, s))
        o_ref[...] = out.astype(o_ref.dtype)


def head_decode(x, w, b, *, hw, wo, stride, tm=512, tk=512):
    """Fused 1x1-conv head + YOLO decode.  Returns (M, N) f32 predictions."""
    M, K = x.shape
    K2, N = w.shape
    assert K == K2
    tm = min(tm, _round_up(M, 16))
    tk = min(tk, _round_up(K, 128))
    Np = _round_up(N, 128)              # lane-dense output channels
    Mp, Kp = _round_up(M, tm), _round_up(K, tk)

    xp = jnp.pad(x.astype(jnp.bfloat16), ((0, Mp - M), (0, Kp - K)))
    wp = jnp.pad(w.astype(jnp.bfloat16), ((0, Kp - K), (0, Np - N)))
    bp = jnp.pad(b.astype(jnp.float32), (0, Np - N)).reshape(1, Np)
    nk = Kp // tk

    kern = functools.partial(_head_decode_kernel, nk=nk, tm=tm, np_=Np,
                             hw=hw, wo=wo, stride=float(stride))
    out = pl.pallas_call(
        kern,
        out_shape=jax.ShapeDtypeStruct((Mp, Np), jnp.float32),
        grid=(Mp // tm, nk),
        in_specs=[
            pl.BlockSpec((tm, tk), lambda i, k: (i, k)),
            pl.BlockSpec((tk, Np), lambda i, k: (k, 0)),
            pl.BlockSpec((1, Np), lambda i, k: (0, 0)),
        ],
        out_specs=pl.BlockSpec((tm, Np), lambda i, k: (i, 0)),
        scratch_shapes=[pltpu.VMEM((tm, Np), jnp.float32)],
        compiler_params=pltpu.CompilerParams(
            dimension_semantics=("parallel", "arbitrary"),
            vmem_limit_bytes=_VMEM_LIMIT,
        ),
        cost_estimate=pl.CostEstimate(
            flops=2 * M * K * N,
            transcendentals=M * Np,
            bytes_accessed=M * K * 2 + K * N * 2 + N * 4 + M * N * 4,
        ),
    )(xp, wp, bp)
    return out[:M, :N]


# ------------------------------- JAX glue -----------------------------------

def im2col(x_nhwc, kh, kw, stride, pad):
    """Conv patches (NHWC) -> (B*Ho*Wo, kh*kw*C), emitted in the input dtype (bf16)."""
    B, H, W, C = x_nhwc.shape
    xp = jnp.pad(x_nhwc, ((0, 0), (pad, pad), (pad, pad), (0, 0)))
    Ho = (H + 2 * pad - kh) // stride + 1
    Wo = (W + 2 * pad - kw) // stride + 1
    cols = []
    for i in range(kh):
        for j in range(kw):
            cols.append(xp[:, i:i + stride * Ho:stride, j:j + stride * Wo:stride, :])
    patches = jnp.concatenate(cols, axis=-1)         # (B, Ho, Wo, kh*kw*C)
    return patches.reshape(B * Ho * Wo, kh * kw * C), Ho, Wo


def conv_w_to_gemm(w_oihw):
    """PyTorch conv weight (Cout, Cin, KH, KW) -> GEMM weight (KH*KW*Cin, Cout)."""
    Cout, Cin, KH, KW = w_oihw.shape
    return jnp.transpose(w_oihw, (2, 3, 1, 0)).reshape(KH * KW * Cin, Cout)


def init_params(key, cin, c1, c2, no):
    ks = jax.random.split(key, 6)
    return {
        "w1": 0.1 * jax.random.normal(ks[0], (c1, cin, 3, 3), jnp.float32),
        "b1": 0.01 * jax.random.normal(ks[1], (c1,), jnp.float32),
        "w2": 0.1 * jax.random.normal(ks[2], (c2, c1, 3, 3), jnp.float32),
        "b2": 0.01 * jax.random.normal(ks[3], (c2,), jnp.float32),
        "wh": 0.1 * jax.random.normal(ks[4], (no, c2, 1, 1), jnp.float32),
        "bh": 0.01 * jax.random.normal(ks[5], (no,), jnp.float32),
    }


def detect_backend_forward(im_nchw, params, *, nc):
    """Equivalent of DetectBackend.forward(im): returns y of shape (B, HW, 5+nc)."""
    no = 5 + nc
    B = im_nchw.shape[0]
    # NCHW -> NHWC, bf16 activations (f32 accumulation inside the kernels).
    x = jnp.transpose(im_nchw, (0, 2, 3, 1)).astype(jnp.bfloat16)

    # stem: 3x3 s2 conv + SiLU (tiled Pallas GEMM, bf16 operands)
    # TODO(synk): 3x3 convs still use a bf16 im2col GEMM; a fully fused in-kernel
    # conv over halo'd NHWC tiles would also remove the ~9x patch expansion in HBM.
    patches, Ho, Wo = im2col(x, 3, 3, 2, 1)
    x = gemm_bias_act(patches, conv_w_to_gemm(params["w1"]), params["b1"],
                      silu=True, out_dtype=jnp.bfloat16).reshape(B, Ho, Wo, -1)

    # conv2: 3x3 s2 conv + SiLU (tiled Pallas GEMM)
    patches, Ho, Wo = im2col(x, 3, 3, 2, 1)
    x = gemm_bias_act(patches, conv_w_to_gemm(params["w2"]), params["b2"],
                      silu=True, out_dtype=jnp.bfloat16).reshape(B, Ho, Wo, -1)

    # detect head: 1x1 conv (plain GEMM, no im2col) fused with the YOLO decode.
    feats = x.reshape(B * Ho * Wo, x.shape[-1])
    total_stride = 4  # two stride-2 convs
    y = head_decode(feats, conv_w_to_gemm(params["wh"]), params["bh"],
                    hw=Ho * Wo, wo=Wo, stride=total_stride)
    return y.reshape(B, Ho * Wo, no)


# --------------------------------- main --------------------------------------

if __name__ == "__main__":
    key = jax.random.PRNGKey(0)
    k_in, k_par = jax.random.split(key)

    B, Cin, H, W = 2, 3, 16, 16          # small NCHW image, PyTorch convention
    C1, C2, NC = 32, 64, 3               # tiny synthetic YOLOv6-style detector
    NO = 5 + NC

    im = jax.random.normal(k_in, (B, Cin, H, W), jnp.float32)
    params = init_params(k_par, Cin, C1, C2, NO)

    fwd = jax.jit(functools.partial(detect_backend_forward, nc=NC))
    y = jax.block_until_ready(fwd(im, params))

    assert y.shape == (B, (H // 4) * (W // 4), NO), y.shape
    assert y.dtype == jnp.float32
    assert bool(jnp.all(jnp.isfinite(y)))
    print("KERNEL_OK")
</pallas_src>

<mosaic_0001>
module attributes {stable_mosaic.version = 11 : i64} {
  func.func @_gemm_bias_act_kernel(%arg0: i32, %arg1: i32, %arg2: i32, %arg3: memref<128x128xbf16, #tpu.memory_space<vmem>>, %arg4: memref<128x128xbf16, #tpu.memory_space<vmem>>, %arg5: memref<1x128xf32, #tpu.memory_space<vmem>>, %arg6: memref<128x128xbf16, #tpu.memory_space<vmem>>, %arg7: memref<128x128xf32, #tpu.memory_space<vmem>>) attributes {dimension_semantics = [#tpu.dimension_semantics<parallel>, #tpu.dimension_semantics<parallel>, #tpu.dimension_semantics<arbitrary>], iteration_bounds = array<i64: 1, 1, 1>, scalar_prefetch = 0 : i64, scratch_operands = 1 : i64, tpu.core_type = #tpu.core_type<tc>, window_params = [{transform_indices = @transform_0, window_bounds = array<i64: 128, 128>}, {transform_indices = @transform_1, window_bounds = array<i64: 128, 128>}, {transform_indices = @transform_2, window_bounds = array<i64: 1, 128>}, {transform_indices = @transform_3, window_bounds = array<i64: 128, 128>}]} {
    %c0_i32 = arith.constant 0 : i32
    %0 = arith.cmpi eq, %arg2, %c0_i32 : i32
    %1 = arith.extui %0 : i1 to i32
    %c0_i32_0 = arith.constant 0 : i32
    %2 = arith.cmpi ne, %1, %c0_i32_0 : i32
    scf.if %2 {
      %cst_10 = arith.constant 0.000000e+00 : f32
      %12 = vector.broadcast %cst_10 : f32 to vector<128x128xf32>
      %c0_11 = arith.constant 0 : index
      %c0_12 = arith.constant 0 : index
      %13 = vector.load %arg7[%c0_11, %c0_12] : memref<128x128xf32, #tpu.memory_space<vmem>>, vector<128x128xf32>
      tpu.vector_store %arg7[%c0_11, %c0_12], %12 {strides = array<i32>} : memref<128x128xf32, #tpu.memory_space<vmem>>, vector<128x128xf32>,
    } else {
    }
    %c0 = arith.constant 0 : index
    %c0_1 = arith.constant 0 : index
    %3 = vector.load %arg7[%c0, %c0_1] : memref<128x128xf32, #tpu.memory_space<vmem>>, vector<128x128xf32>
    %c0_2 = arith.constant 0 : index
    %c0_3 = arith.constant 0 : index
    %4 = vector.load %arg3[%c0_2, %c0_3] : memref<128x128xbf16, #tpu.memory_space<vmem>>, vector<128x128xbf16>
    %c0_4 = arith.constant 0 : index
    %c0_5 = arith.constant 0 : index
    %5 = vector.load %arg4[%c0_4, %c0_5] : memref<128x128xbf16, #tpu.memory_space<vmem>>, vector<128x128xbf16>
    %cst = arith.constant dense<0.000000e+00> : vector<128x128xf32>
    %6 = tpu.matmul %4, %5, %cst {dimension_numbers = #tpu.dot_dimension_numbers<[1], [0], [0], [1], [0, 0, 1, 1], [], []>} : vector<128x128xbf16>, vector<128x128xbf16>, vector<128x128xf32> -> vector<128x128xf32>
    %7 = arith.addf %3, %6 : vector<128x128xf32>
    %c0_6 = arith.constant 0 : index
    %c0_7 = arith.constant 0 : index
    %8 = vector.load %arg7[%c0_6, %c0_7] : memref<128x128xf32, #tpu.memory_space<vmem>>, vector<128x128xf32>
    tpu.vector_store %arg7[%c0_6, %c0_7], %7 {strides = array<i32>} : memref<128x128xf32, #tpu.memory_space<vmem>>, vector<128x128xf32>,
    %c0_i32_8 = arith.constant 0 : i32
    %9 = arith.cmpi eq, %arg2, %c0_i32_8 : i32
    %10 = arith.extui %9 : i1 to i32
    %c0_i32_9 = arith.constant 0 : i32
    %11 = arith.cmpi ne, %10, %c0_i32_9 : i32
    scf.if %11 {
      %c0_10 = arith.constant 0 : index
      %c0_11 = arith.constant 0 : index
      %12 = vector.load %arg7[%c0_10, %c0_11] : memref<128x128xf32, #tpu.memory_space<vmem>>, vector<128x128xf32>
      %c0_12 = arith.constant 0 : index
      %c0_13 = arith.constant 0 : index
      %13 = vector.load %arg5[%c0_12, %c0_13] : memref<1x128xf32, #tpu.memory_space<vmem>>, vector<1x128xf32>
      %14 = vector.broadcast %13 : vector<1x128xf32> to vector<128x128xf32>
      %15 = arith.addf %12, %14 : vector<128x128xf32>
      %16 = arith.negf %15 : vector<128x128xf32>
      %17 = math.exp %16 : vector<128x128xf32>
      %cst_14 = arith.constant 1.000000e+00 : f32
      %18 = vector.broadcast %cst_14 : f32 to vector<128x128xf32>
      %19 = arith.addf %18, %17 : vector<128x128xf32>
      %20 = arith.divf %18, %19 : vector<128x128xf32>
      %21 = arith.mulf %15, %20 : vector<128x128xf32>
      %22 = arith.truncf %21 : vector<128x128xf32> to vector<128x128xbf16>
      %c0_15 = arith.constant 0 : index
      %c0_16 = arith.constant 0 : index
      %23 = vector.load %arg6[%c0_15, %c0_16] : memref<128x128xbf16, #tpu.memory_space<vmem>>, vector<128x128xbf16>
      tpu.vector_store %arg6[%c0_15, %c0_16], %22 {strides = array<i32>} : memref<128x128xbf16, #tpu.memory_space<vmem>>, vector<128x128xbf16>,
    } else {
    }
    return
  }
  func.func @transform_0(%arg0: i32, %arg1: i32, %arg2: i32) -> (i32, i32) {
    %c0_i32 = arith.constant 0 : i32
    return %arg0, %arg2 : i32, i32
  }
  func.func @transform_1(%arg0: i32, %arg1: i32, %arg2: i32) -> (i32, i32) {
    %c0_i32 = arith.constant 0 : i32
    return %arg2, %arg1 : i32, i32
  }
  func.func @transform_2(%arg0: i32, %arg1: i32, %arg2: i32) -> (i32, i32) {
    %c0_i32 = arith.constant 0 : i32
    %c0_i32_0 = arith.constant 0 : i32
    return %c0_i32, %arg1 : i32, i32
  }
  func.func @transform_3(%arg0: i32, %arg1: i32, %arg2: i32) -> (i32, i32) {
    %c0_i32 = arith.constant 0 : i32
    return %arg0, %arg1 : i32, i32
  }
}

module attributes {stable_mosaic.version = 11 : i64} {
  func.func @_gemm_bias_act_kernel(%arg0: i32, %arg1: i32, %arg2: i32, %arg3: memref<32x384xbf16, #tpu.memory_space<vmem>>, %arg4: memref<384x128xbf16, #tpu.memory_space<vmem>>, %arg5: memref<1x128xf32, #tpu.memory_space<vmem>>, %arg6: memref<32x128xbf16, #tpu.memory_space<vmem>>, %arg7: memref<32x128xf32, #tpu.memory_space<vmem>>) attributes {dimension_semantics = [#tpu.dimension_semantics<parallel>, #tpu.dimension_semantics<parallel>, #tpu.dimension_semantics<arbitrary>], iteration_bounds = array<i64: 1, 1, 1>, scalar_prefetch = 0 : i64, scratch_operands = 1 : i64, tpu.core_type = #tpu.core_type<tc>, window_params = [{transform_indices = @transform_0, window_bounds = array<i64: 32, 384>}, {transform_indices = @transform_1, window_bounds = array<i64: 384, 128>}, {transform_indices = @transform_2, window_bounds = array<i64: 1, 128>}, {transform_indices = @transform_3, window_bounds = array<i64: 32, 128>}]} {
    %c0_i32 = arith.constant 0 : i32
    %0 = arith.cmpi eq, %arg2, %c0_i32 : i32
    %1 = arith.extui %0 : i1 to i32
    %c0_i32_0 = arith.constant 0 : i32
    %2 = arith.cmpi ne, %1, %c0_i32_0 : i32
    scf.if %2 {
      %cst_10 = arith.constant 0.000000e+00 : f32
      %12 = vector.broadcast %cst_10 : f32 to vector<32x128xf32>
      %c0_11 = arith.constant 0 : index
      %c0_12 = arith.constant 0 : index
      %13 = vector.load %arg7[%c0_11, %c0_12] : memref<32x128xf32, #tpu.memory_space<vmem>>, vector<32x128xf32>
      tpu.vector_store %arg7[%c0_11, %c0_12], %12 {strides = array<i32>} : memref<32x128xf32, #tpu.memory_space<vmem>>, vector<32x128xf32>,
    } else {
    }
    %c0 = arith.constant 0 : index
    %c0_1 = arith.constant 0 : index
    %3 = vector.load %arg7[%c0, %c0_1] : memref<32x128xf32, #tpu.memory_space<vmem>>, vector<32x128xf32>
    %c0_2 = arith.constant 0 : index
    %c0_3 = arith.constant 0 : index
    %4 = vector.load %arg3[%c0_2, %c0_3] : memref<32x384xbf16, #tpu.memory_space<vmem>>, vector<32x384xbf16>
    %c0_4 = arith.constant 0 : index
    %c0_5 = arith.constant 0 : index
    %5 = vector.load %arg4[%c0_4, %c0_5] : memref<384x128xbf16, #tpu.memory_space<vmem>>, vector<384x128xbf16>
    %cst = arith.constant dense<0.000000e+00> : vector<32x128xf32>
    %6 = tpu.matmul %4, %5, %cst {dimension_numbers = #tpu.dot_dimension_numbers<[1], [0], [0], [1], [0, 0, 1, 1], [], []>} : vector<32x384xbf16>, vector<384x128xbf16>, vector<32x128xf32> -> vector<32x128xf32>
    %7 = arith.addf %3, %6 : vector<32x128xf32>
    %c0_6 = arith.constant 0 : index
    %c0_7 = arith.constant 0 : index
    %8 = vector.load %arg7[%c0_6, %c0_7] : memref<32x128xf32, #tpu.memory_space<vmem>>, vector<32x128xf32>
    tpu.vector_store %arg7[%c0_6, %c0_7], %7 {strides = array<i32>} : memref<32x128xf32, #tpu.memory_space<vmem>>, vector<32x128xf32>,
    %c0_i32_8 = arith.constant 0 : i32
    %9 = arith.cmpi eq, %arg2, %c0_i32_8 : i32
    %10 = arith.extui %9 : i1 to i32
    %c0_i32_9 = arith.constant 0 : i32
    %11 = arith.cmpi ne, %10, %c0_i32_9 : i32
    scf.if %11 {
      %c0_10 = arith.constant 0 : index
      %c0_11 = arith.constant 0 : index
      %12 = vector.load %arg7[%c0_10, %c0_11] : memref<32x128xf32, #tpu.memory_space<vmem>>, vector<32x128xf32>
      %c0_12 = arith.constant 0 : index
      %c0_13 = arith.constant 0 : index
      %13 = vector.load %arg5[%c0_12, %c0_13] : memref<1x128xf32, #tpu.memory_space<vmem>>, vector<1x128xf32>
      %14 = vector.broadcast %13 : vector<1x128xf32> to vector<32x128xf32>
      %15 = arith.addf %12, %14 : vector<32x128xf32>
      %16 = arith.negf %15 : vector<32x128xf32>
      %17 = math.exp %16 : vector<32x128xf32>
      %cst_14 = arith.constant 1.000000e+00 : f32
      %18 = vector.broadcast %cst_14 : f32 to vector<32x128xf32>
      %19 = arith.addf %18, %17 : vector<32x128xf32>
      %20 = arith.divf %18, %19 : vector<32x128xf32>
      %21 = arith.mulf %15, %20 : vector<32x128xf32>
      %22 = arith.truncf %21 : vector<32x128xf32> to vector<32x128xbf16>
      %c0_15 = arith.constant 0 : index
      %c0_16 = arith.constant 0 : index
      %23 = vector.load %arg6[%c0_15, %c0_16] : memref<32x128xbf16, #tpu.memory_space<vmem>>, vector<32x128xbf16>
      tpu.vector_store %arg6[%c0_15, %c0_16], %22 {strides = array<i32>} : memref<32x128xbf16, #tpu.memory_space<vmem>>, vector<32x128xbf16>,
    } else {
    }
    return
  }
  func.func @transform_0(%arg0: i32, %arg1: i32, %arg2: i32) -> (i32, i32) {
    %c0_i32 = arith.constant 0 : i32
    return %arg0, %arg2 : i32, i32
  }
  func.func @transform_1(%arg0: i32, %arg1: i32, %arg2: i32) -> (i32, i32) {
    %c0_i32 = arith.constant 0 : i32
    return %arg2, %arg1 : i32, i32
  }
  func.func @transform_2(%arg0: i32, %arg1: i32, %arg2: i32) -> (i32, i32) {
    %c0_i32 = arith.constant 0 : i32
    %c0_i32_0 = arith.constant 0 : i32
    return %c0_i32, %arg1 : i32, i32
  }
  func.func @transform_3(%arg0: i32, %arg1: i32, %arg2: i32) -> (i32, i32) {
    %c0_i32 = arith.constant 0 : i32
    return %arg0, %arg1 : i32, i32
  }
}

module attributes {stable_mosaic.version = 11 : i64} {
  func.func @_head_decode_kernel(%arg0: i32, %arg1: i32, %arg2: memref<32x128xbf16, #tpu.memory_space<vmem>>, %arg3: memref<128x128xbf16, #tpu.memory_space<vmem>>, %arg4: memref<1x128xf32, #tpu.memory_space<vmem>>, %arg5: memref<32x128xf32, #tpu.memory_space<vmem>>, %arg6: memref<32x128xf32, #tpu.memory_space<vmem>>) attributes {dimension_semantics = [#tpu.dimension_semantics<parallel>, #tpu.dimension_semantics<arbitrary>], iteration_bounds = array<i64: 1, 1>, scalar_prefetch = 0 : i64, scratch_operands = 1 : i64, tpu.core_type = #tpu.core_type<tc>, window_params = [{transform_indices = @transform_0, window_bounds = array<i64: 32, 128>}, {transform_indices = @transform_1, window_bounds = array<i64: 128, 128>}, {pipeline_mode = #tpu.pipeline_mode<synchronous>, transform_indices = @transform_2, window_bounds = array<i64: 1, 128>}, {transform_indices = @transform_3, window_bounds = array<i64: 32, 128>}]} {
    %c32_i32 = arith.constant 32 : i32
    %0 = arith.muli %arg0, %c32_i32 : i32
    %c0_i32 = arith.constant 0 : i32
    %1 = arith.cmpi eq, %arg1, %c0_i32 : i32
    %2 = arith.extui %1 : i1 to i32
    %c0_i32_0 = arith.constant 0 : i32
    %3 = arith.cmpi ne, %2, %c0_i32_0 : i32
    scf.if %3 {
      %cst_10 = arith.constant 0.000000e+00 : f32
      %13 = vector.broadcast %cst_10 : f32 to vector<32x128xf32>
      %c0_11 = arith.constant 0 : index
      %c0_12 = arith.constant 0 : index
      %14 = vector.load %arg6[%c0_11, %c0_12] : memref<32x128xf32, #tpu.memory_space<vmem>>, vector<32x128xf32>
      tpu.vector_store %arg6[%c0_11, %c0_12], %13 {strides = array<i32>} : memref<32x128xf32, #tpu.memory_space<vmem>>, vector<32x128xf32>,
    } else {
    }
    %c0 = arith.constant 0 : index
    %c0_1 = arith.constant 0 : index
    %4 = vector.load %arg6[%c0, %c0_1] : memref<32x128xf32, #tpu.memory_space<vmem>>, vector<32x128xf32>
    %c0_2 = arith.constant 0 : index
    %c0_3 = arith.constant 0 : index
    %5 = vector.load %arg2[%c0_2, %c0_3] : memref<32x128xbf16, #tpu.memory_space<vmem>>, vector<32x128xbf16>
    %c0_4 = arith.constant 0 : index
    %c0_5 = arith.constant 0 : index
    %6 = vector.load %arg3[%c0_4, %c0_5] : memref<128x128xbf16, #tpu.memory_space<vmem>>, vector<128x128xbf16>
    %cst = arith.constant dense<0.000000e+00> : vector<32x128xf32>
    %7 = tpu.matmul %5, %6, %cst {dimension_numbers = #tpu.dot_dimension_numbers<[1], [0], [0], [1], [0, 0, 1, 1], [], []>} : vector<32x128xbf16>, vector<128x128xbf16>, vector<32x128xf32> -> vector<32x128xf32>
    %8 = arith.addf %4, %7 : vector<32x128xf32>
    %c0_6 = arith.constant 0 : index
    %c0_7 = arith.constant 0 : index
    %9 = vector.load %arg6[%c0_6, %c0_7] : memref<32x128xf32, #tpu.memory_space<vmem>>, vector<32x128xf32>
    tpu.vector_store %arg6[%c0_6, %c0_7], %8 {strides = array<i32>} : memref<32x128xf32, #tpu.memory_space<vmem>>, vector<32x128xf32>,
    %c0_i32_8 = arith.constant 0 : i32
    %10 = arith.cmpi eq, %arg1, %c0_i32_8 : i32
    %11 = arith.extui %10 : i1 to i32
    %c0_i32_9 = arith.constant 0 : i32
    %12 = arith.cmpi ne, %11, %c0_i32_9 : i32
    scf.if %12 {
      %c0_10 = arith.constant 0 : index
      %c0_11 = arith.constant 0 : index
      %13 = vector.load %arg6[%c0_10, %c0_11] : memref<32x128xf32, #tpu.memory_space<vmem>>, vector<32x128xf32>
      %c0_12 = arith.constant 0 : index
      %c0_13 = arith.constant 0 : index
      %14 = vector.load %arg4[%c0_12, %c0_13] : memref<1x128xf32, #tpu.memory_space<vmem>>, vector<1x128xf32>
      %15 = vector.broadcast %14 : vector<1x128xf32> to vector<32x128xf32>
      %16 = arith.addf %13, %15 : vector<32x128xf32>
      %17 = arith.negf %16 : vector<32x128xf32>
      %18 = math.exp %17 : vector<32x128xf32>
      %cst_14 = arith.constant 1.000000e+00 : f32
      %19 = vector.broadcast %cst_14 : f32 to vector<32x128xf32>
      %20 = arith.addf %19, %18 : vector<32x128xf32>
      %21 = arith.divf %19, %20 : vector<32x128xf32>
      %22 = tpu.iota {dimensions = array<i32: 0>} : vector<32x1xi32>
      %23 = vector.broadcast %0 : i32 to vector<32x1xi32>
      %24 = arith.addi %22, %23 : vector<32x1xi32>
      %c15_i32 = arith.constant 15 : i32
      %25 = vector.broadcast %c15_i32 : i32 to vector<32x1xi32>
      %26 = arith.andi %24, %25 : vector<32x1xi32>
      %c3_i32 = arith.constant 3 : i32
      %27 = vector.broadcast %c3_i32 : i32 to vector<32x1xi32>
      %28 = arith.andi %26, %27 : vector<32x1xi32>
      %29 = arith.sitofp %28 : vector<32x1xi32> to vector<32x1xf32>
      %c2_i32 = arith.constant 2 : i32
      %30 = vector.broadcast %c2_i32 : i32 to vector<32x1xi32>
      %31 = arith.shrsi %26, %30 : vector<32x1xi32>
      %32 = arith.sitofp %31 : vector<32x1xi32> to vector<32x1xf32>
      %33 = tpu.iota {dimensions = array<i32: 1>} : vector<32x128xi32>
      %c0_i32_15 = arith.constant 0 : i32
      %34 = vector.broadcast %c0_i32_15 : i32 to vector<32x128xi32>
      %35 = arith.cmpi eq, %33, %34 : vector<32x128xi32>
      %c1_i32 = arith.constant 1 : i32
      %36 = vector.broadcast %c1_i32 : i32 to vector<32x128xi32>
      %37 = arith.cmpi eq, %33, %36 : vector<32x128xi32>
      %cst_16 = arith.constant 0.000000e+00 : f32
      %38 = vector.shape_cast %32 : vector<32x1xf32> to vector<32x1xf32>
      %39 = vector.broadcast %38 : vector<32x1xf32> to vector<32x128xf32>
      %40 = vector.broadcast %cst_16 : f32 to vector<32x128xf32>
      %41 = arith.select %37, %39, %40 : vector<32x128xi1>, vector<32x128xf32>
      %42 = vector.shape_cast %29 : vector<32x1xf32> to vector<32x1xf32>
      %43 = vector.broadcast %42 : vector<32x1xf32> to vector<32x128xf32>
      %44 = arith.select %35, %43, %41 : vector<32x128xi1>, vector<32x128xf32>
      %cst_17 = arith.constant 2.000000e+00 : f32
      %45 = vector.broadcast %cst_17 : f32 to vector<32x128xf32>
      %46 = arith.mulf %45, %21 : vector<32x128xf32>
      %cst_18 = arith.constant 5.000000e-01 : f32
      %47 = vector.broadcast %cst_18 : f32 to vector<32x128xf32>
      %48 = arith.subf %46, %47 : vector<32x128xf32>
      %49 = arith.addf %48, %44 : vector<32x128xf32>
      %cst_19 = arith.constant 4.000000e+00 : f32
      %50 = vector.broadcast %cst_19 : f32 to vector<32x128xf32>
      %51 = arith.mulf %49, %50 : vector<32x128xf32>
      %cst_20 = arith.constant 4.000000e+00 : f32
      %52 = vector.broadcast %cst_20 : f32 to vector<32x128xf32>
      %53 = arith.mulf %52, %21 : vector<32x128xf32>
      %54 = arith.mulf %53, %21 : vector<32x128xf32>
      %cst_21 = arith.constant 4.000000e+00 : f32
      %55 = vector.broadcast %cst_21 : f32 to vector<32x128xf32>
      %56 = arith.mulf %54, %55 : vector<32x128xf32>
      %c2_i32_22 = arith.constant 2 : i32
      %57 = vector.broadcast %c2_i32_22 : i32 to vector<32x128xi32>
      %58 = arith.cmpi slt, %33, %57 : vector<32x128xi32>
      %c4_i32 = arith.constant 4 : i32
      %59 = vector.broadcast %c4_i32 : i32 to vector<32x128xi32>
      %60 = arith.cmpi slt, %33, %59 : vector<32x128xi32>
      %61 = arith.select %60, %56, %21 : vector<32x128xi1>, vector<32x128xf32>
      %62 = arith.select %58, %51, %61 : vector<32x128xi1>, vector<32x128xf32>
      %c0_23 = arith.constant 0 : index
      %c0_24 = arith.constant 0 : index
      %63 = vector.load %arg5[%c0_23, %c0_24] : memref<32x128xf32, #tpu.memory_space<vmem>>, vector<32x128xf32>
      tpu.vector_store %arg5[%c0_23, %c0_24], %62 {strides = array<i32>} : memref<32x128xf32, #tpu.memory_space<vmem>>, vector<32x128xf32>,
    } else {
    }
    return
  }
  func.func @transform_0(%arg0: i32, %arg1: i32) -> (i32, i32) {
    %c0_i32 = arith.constant 0 : i32
    return %arg0, %arg1 : i32, i32
  }
  func.func @transform_1(%arg0: i32, %arg1: i32) -> (i32, i32) {
    %c0_i32 = arith.constant 0 : i32
    %c0_i32_0 = arith.constant 0 : i32
    return %arg1, %c0_i32 : i32, i32
  }
  func.func @transform_2(%arg0: i32, %arg1: i32) -> (i32, i32) {
    %c0_i32 = arith.constant 0 : i32
    %c0_i32_0 = arith.constant 0 : i32
    %c0_i32_1 = arith.constant 0 : i32
    return %c0_i32, %c0_i32_0 : i32, i32
  }
  func.func @transform_3(%arg0: i32, %arg1: i32) -> (i32, i32) {
    %c0_i32 = arith.constant 0 : i32
    %c0_i32_0 = arith.constant 0 : i32
    return %arg0, %c0_i32 : i32, i32
  }
}

</mosaic_0001>

<bundles_post_ra>
// kernel: detect_backend_forward.3
= control target key start
LH: loop header
LB: loop body
LE: loop exit
PB: predicated region body
PF: predicated region fallthrough
CT: control target
= control target key end

     0   :  { %s961_s1 = inlined_call_operand.vmem [shape: bf16[128,128], index: 1, kind: input, shape index: {}]   ;;  %s962_s0 = inlined_call_operand.vmem [shape: bf16[128,128], index: 0, kind: input, shape index: {}]   ;;  %s963_s2 = inlined_call_operand.vmem [shape: f32[1,128], index: 2, kind: input, shape index: {}]   ;;  %s964_s3 = inlined_call_operand.vmem [shape: bf16[128,128], index: 3, kind: output, shape index: {}]  }
   0x1   :  { %v722_v0 = vld [vmem:[%s961_s1 + $0x38] sm:$0xff]   ;;  %v723_v1 = vld [vmem:[%s961_s1 + $0x30] sm:$0xff]   ;;  %v724_v2 = vld [vmem:[%s961_s1 + $0x28] sm:$0xff]  }
   0x2   :  { %674 = vmatprep.subr.bf16.mxu0 %v722_v0  ;;  %706 = vmatprep.subr.bf16.mxu1 %v722_v0  ;;  %v725_v3 = vld [vmem:[%s961_s1 + $0x20] sm:$0xff]   ;;  %v726_v6 = vld [vmem:[%s961_s1 + $0x18] sm:$0xff]   ;;  %v727_v7 = vld [vmem:[%s961_s1 + $0x10] sm:$0xff]  }
   0x3   :  { %675 = vmatpush3.bf16.msra.mxu0 %v722_v0  ;;  %714 = vmatpush3.bf16.msra.mxu1 %v722_v0  ;;  %v730_v4 = vld [vmem:[%s962_s0] sm:$0xff]   ;;  %v728_v8 = vld [vmem:[%s961_s1 + $0x8] sm:$0xff]   ;;  %v734_v12 = vld [vmem:[%s962_s0 + $0x10] sm:$0xff]  }
   0x4   :  { %676 = vmatprep.subr.bf16.mxu0 %v723_v1  ;;  %707 = vmatprep.subr.bf16.mxu1 %v723_v1  ;;  %v731_v5 = vld [vmem:[%s962_s0 + $0x20] sm:$0xff]   ;;  %v732_v10 = vld [vmem:[%s962_s0 + $0x8] sm:$0xff]   ;;  %v735_v13 = vld [vmem:[%s962_s0 + $0x30] sm:$0xff]  }
   0x5   :  { %690 = vmatprep.mubr.bf16.mxu0 %v730_v4  ;;  %698 = vmatprep.mubr.bf16.mxu1 %v731_v5  ;;  %v729_v9 = vld [vmem:[%s961_s1] sm:$0xff]   ;;  %v733_v11 = vld [vmem:[%s962_s0 + $0x28] sm:$0xff]   ;;  %v736_v14 = vld [vmem:[%s962_s0 + $0x18] sm:$0xff]  }
   0x6   :  { %v737_v15 = vld [vmem:[%s962_s0 + $0x38] sm:$0xff]   ;;  %v562_v16 = vld [vmem:[%s963_s2] ss:$0 sm:$0xff] }
   0x7   :  { %677 = vmatpush3.bf16.msra.mxu0 %v723_v1  ;;  %715 = vmatpush3.bf16.msra.mxu1 %v723_v1 }
   0x8   :  { %678 = vmatprep.subr.bf16.mxu0 %v724_v2  ;;  %708 = vmatprep.subr.bf16.mxu1 %v724_v2 }
   0xb   :  { %679 = vmatpush3.bf16.msra.mxu0 %v724_v2  ;;  %716 = vmatpush3.bf16.msra.mxu1 %v724_v2 }
   0xc   :  { %680 = vmatprep.subr.bf16.mxu0 %v725_v3  ;;  %709 = vmatprep.subr.bf16.mxu1 %v725_v3 }
   0xf   :  { %681 = vmatpush3.bf16.msra.mxu0 %v725_v3  ;;  %717 = vmatpush3.bf16.msra.mxu1 %v725_v3 }
  0x10   :  { %682 = vmatprep.subr.bf16.mxu0 %v726_v6  ;;  %710 = vmatprep.subr.bf16.mxu1 %v726_v6 }
  0x13   :  { %683 = vmatpush3.bf16.msra.mxu0 %v726_v6  ;;  %718 = vmatpush3.bf16.msra.mxu1 %v726_v6 }
  0x14   :  { %684 = vmatprep.subr.bf16.mxu0 %v727_v7  ;;  %711 = vmatprep.subr.bf16.mxu1 %v727_v7 }
  0x17   :  { %685 = vmatpush3.bf16.msra.mxu0 %v727_v7  ;;  %719 = vmatpush3.bf16.msra.mxu1 %v727_v7 }
  0x18   :  { %686 = vmatprep.subr.bf16.mxu0 %v728_v8  ;;  %712 = vmatprep.subr.bf16.mxu1 %v728_v8 }
  0x1b   :  { %687 = vmatpush3.bf16.msra.mxu0 %v728_v8  ;;  %720 = vmatpush3.bf16.msra.mxu1 %v728_v8 }
  0x1c   :  { %688 = vmatprep.subr.bf16.mxu0 %v729_v9  ;;  %713 = vmatprep.subr.bf16.mxu1 %v729_v9 }
  0x1f   :  { %689 = vmatpush3.bf16.msra.mxu0 %v729_v9  ;;  %721 = vmatpush3.bf16.msra.mxu1 %v729_v9 }
  0x22   :  { %691 = vmatmul.mubr.bf16.vlgmr.msra.gmra.mxu0 %v732_v10  ;;  %699 = vmatmul.mubr.bf16.vlgmr.msra.gmra.mxu1 %v733_v11 }
  0x23   :  { %694 = vmatprep.mubr.bf16.mxu0 %v734_v12  ;;  %702 = vmatprep.mubr.bf16.mxu1 %v735_v13 }
  0x2a   :  { %695 = vmatmul.mubr.bf16.gmra.mxu0 %v736_v14  ;;  %703 = vmatmul.mubr.bf16.gmra.mxu1 %v737_v15 }
  0xe2   :  { %v692_v17 = vpop.f32.mrf.mxu0  ;;  %v700_v18 = vpop.f32.mrf.mxu1 }
  0xe3   :  { %v873_v19 = vadd.f32 %v692_v17, %v562_v16  ;;  %v875_v20 = vadd.f32 %v700_v18, %v562_v16 }
  0xe4   :  { %v213_v21 = vpop.f32.mrf.mxu0  ;;  %v245_v22 = vpop.f32.mrf.mxu1 }
  0xe5   :  { %v565_v23 = vmul.f32 -1.442695, %v873_v19  ;;  %v573_v24 = vmul.f32 -1.442695, %v875_v20  ;;  %v879_v25 = vadd.f32 %v562_v16, %v213_v21  ;;  %v881_v26 = vadd.f32 %v562_v16, %v245_v22 }
  0xe6   :  { %v693_v27 = vpop.f32.mrf.mxu0  ;;  %v701_v28 = vpop.f32.mrf.mxu1 }
  0xe7   :  { %738 = vpow2.f32 %v565_v23  ;;  %v563_v29 = vmul.f32 -1.442695, %v879_v25  ;;  %v571_v30 = vmul.f32 -1.442695, %v881_v26  ;;  %v885_v31 = vadd.f32 %v693_v27, %v562_v16 }
  0xe8   :  { %740 = vpow2.f32 %v573_v24  ;;  %v887_v32 = vadd.f32 %v701_v28, %v562_v16  ;;  %v216_v33 = vpop.f32.mrf.mxu0  ;;  %v248_v34 = vpop.f32.mrf.mxu1 }
  0xe9   :  { %742 = vpow2.f32 %v563_v29  ;;  %v566_v35 = vmul.f32 -1.442695, %v885_v31  ;;  %v890_v36 = vadd.f32 %v562_v16, %v216_v33  ;;  %v892_v37 = vadd.f32 %v562_v16, %v248_v34 }
  0xea   :  { %744 = vpow2.f32 %v571_v30  ;;  %v574_v38 = vmul.f32 -1.442695, %v887_v32  ;;  %v696_v39 = vpop.f32.mrf.mxu0  ;;  %v704_v40 = vpop.f32.mrf.mxu1 }
  0xeb   :  { %746 = vpow2.f32 %v566_v35  ;;  %v564_v41 = vmul.f32 -1.442695, %v890_v36  ;;  %v572_v42 = vmul.f32 -1.442695, %v892_v37  ;;  %v897_v43 = vadd.f32 %v696_v39, %v562_v16 }
  0xec   :  { %748 = vpow2.f32 %v574_v38  ;;  %v899_v44 = vadd.f32 %v704_v40, %v562_v16  ;;  %v229_v45 = vpop.f32.mrf.mxu0  ;;  %v261_v46 = vpop.f32.mrf.mxu1 }
  0xed   :  { %750 = vpow2.f32 %v564_v41  ;;  %v569_v47 = vmul.f32 -1.442695, %v897_v43  ;;  %v902_v48 = vadd.f32 %v562_v16, %v229_v45  ;;  %v904_v49 = vadd.f32 %v562_v16, %v261_v46 }
  0xee   :  { %752 = vpow2.f32 %v572_v42  ;;  %v577_v50 = vmul.f32 -1.442695, %v899_v44  ;;  %v697_v51 = vpop.f32.mrf.mxu0  ;;  %v705_v52 = vpop.f32.mrf.mxu1 }
  0xef   :  { %754 = vpow2.f32 %v569_v47  ;;  %v567_v53 = vmul.f32 -1.442695, %v902_v48  ;;  %v575_v54 = vmul.f32 -1.442695, %v904_v49  ;;  %v909_v55 = vadd.f32 %v697_v51, %v562_v16 }
  0xf0   :  { %756 = vpow2.f32 %v577_v50  ;;  %v911_v56 = vadd.f32 %v705_v52, %v562_v16  ;;  %v232_v57 = vpop.f32.mrf.mxu0  ;;  %v264_v58 = vpop.f32.mrf.mxu1 }
  0xf1   :  { %758 = vpow2.f32 %v567_v53  ;;  %v570_v59 = vmul.f32 -1.442695, %v909_v55  ;;  %v914_v60 = vadd.f32 %v562_v16, %v232_v57  ;;  %v916_v61 = vadd.f32 %v562_v16, %v264_v58 }
  0xf2   :  { %760 = vpow2.f32 %v575_v54  ;;  %v578_v62 = vmul.f32 -1.442695, %v911_v56 }
  0xf3   :  { %762 = vpow2.f32 %v570_v59  ;;  %v568_v63 = vmul.f32 -1.442695, %v914_v60  ;;  %v576_v0 = vmul.f32 -1.442695, %v916_v61 }
  0xf4   :  { %v739_v1 = vpop.eup %738  ;;  %764 = vpow2.f32 %v578_v62 }
  0xf5   :  { %v741_v2 = vpop.eup %740  ;;  %v400_v3 = vadd.f32 1.0, %v739_v1  ;;  %766 = vpow2.f32 %v568_v63 }
  0xf6   :  { %v743_v4 = vpop.eup %742  ;;  %v408_v5 = vadd.f32 1.0, %v741_v2  ;;  %768 = vpow2.f32 %v576_v0 }
  0xf7   :  { %v745_v6 = vpop.eup %744  ;;  %770 = vrcp.f32 %v400_v3  ;;  %v398_v7 = vadd.f32 1.0, %v743_v4 }
  0xf8   :  { %v747_v8 = vpop.eup %746  ;;  %772 = vrcp.f32 %v408_v5  ;;  %v406_v9 = vadd.f32 1.0, %v745_v6 }
  0xf9   :  { %v749_v10 = vpop.eup %748  ;;  %774 = vrcp.f32 %v398_v7  ;;  %v401_v11 = vadd.f32 1.0, %v747_v8 }
  0xfa   :  { %v751_v12 = vpop.eup %750  ;;  %776 = vrcp.f32 %v406_v9  ;;  %v409_v13 = vadd.f32 1.0, %v749_v10 }
  0xfb   :  { %v753_v14 = vpop.eup %752  ;;  %778 = vrcp.f32 %v401_v11  ;;  %v399_v15 = vadd.f32 1.0, %v751_v12 }
  0xfc   :  { %v755_v16 = vpop.eup %754  ;;  %780 = vrcp.f32 %v409_v13  ;;  %v407_v17 = vadd.f32 1.0, %v753_v14 }
  0xfd   :  { %v757_v18 = vpop.eup %756  ;;  %782 = vrcp.f32 %v399_v15  ;;  %v404_v21 = vadd.f32 1.0, %v755_v16 }
  0xfe   :  { %v759_v22 = vpop.eup %758  ;;  %784 = vrcp.f32 %v407_v17  ;;  %v412_v23 = vadd.f32 1.0, %v757_v18 }
  0xff   :  { %v761_v24 = vpop.eup %760  ;;  %786 = vrcp.f32 %v404_v21  ;;  %v402_v27 = vadd.f32 1.0, %v759_v22 }
 0x100   :  { %v763_v28 = vpop.eup %762  ;;  %788 = vrcp.f32 %v412_v23  ;;  %v410_v29 = vadd.f32 1.0, %v761_v24 }
 0x101   :  { %v765_v30 = vpop.eup %764  ;;  %790 = vrcp.f32 %v402_v27  ;;  %v405_v33 = vadd.f32 1.0, %v763_v28 }
 0x102   :  { %v767_v34 = vpop.eup %766  ;;  %792 = vrcp.f32 %v410_v29  ;;  %v413_v35 = vadd.f32 1.0, %v765_v30 }
 0x103   :  { %v769_v38 = vpop.eup %768  ;;  %794 = vrcp.f32 %v405_v33  ;;  %v403_v39 = vadd.f32 1.0, %v767_v34 }
 0x104   :  { %v771_v40 = vpop.eup %770  ;;  %796 = vrcp.f32 %v413_v35  ;;  %v411_v41 = vadd.f32 1.0, %v769_v38 }
 0x105   :  { %v773_v42 = vpop.eup %772  ;;  %798 = vrcp.f32 %v403_v39  ;;  %v448_v51 = vmul.f32 %v771_v40, %v873_v19 }
 0x106   :  { %v775_v45 = vpop.eup %774  ;;  %800 = vrcp.f32 %v411_v41  ;;  %v456_v54 = vmul.f32 %v773_v42, %v875_v20 }
 0x107   :  { %v777_v46 = vpop.eup %776  ;;  %v446_v59 = vmul.f32 %v775_v45, %v879_v25 }
 0x108   :  { %v779_v47 = vpop.eup %778  ;;  %v454_v1 = vmul.f32 %v777_v46, %v881_v26 }
 0x109   :  { %v781_v50 = vpop.eup %780  ;;  %v449_v52 = vmul.f32 %v779_v47, %v885_v31 }
 0x10a   :  { %v783_v53 = vpop.eup %782  ;;  %v457_v57 = vmul.f32 %v781_v50, %v887_v32 }
 0x10b   :  { %v785_v58 = vpop.eup %784  ;;  %v619_v62 = vpack.c.bf16 %v449_v52, %v448_v51  ;;  %v447_v63 = vmul.f32 %v783_v53, %v890_v36 }
 0x10c   :  { %v787_v0 = vpop.eup %786  ;;  %v639_v2 = vpack.c.bf16 %v457_v57, %v456_v54  ;;  %v455_v3 = vmul.f32 %v785_v58, %v892_v37 }
 0x10d   :  { %v789_v19 = vpop.eup %788  ;;  %651 = vst [vmem:[%s964_s3 + $0x8] sm:$0xff] %v619_v62   ;;  %v614_v20 = vpack.c.bf16 %v447_v63, %v446_v59  ;;  %v452_v37 = vmul.f32 %v787_v0, %v897_v43 }
 0x10e   :  { %v791_v31 = vpop.eup %790  ;;  %655 = vst [vmem:[%s964_s3 + $0x28] sm:$0xff] %v639_v2   ;;  %v634_v25 = vpack.c.bf16 %v455_v3, %v454_v1  ;;  %v460_v6 = vmul.f32 %v789_v19, %v899_v44 }
 0x10f   :  { %v793_v32 = vpop.eup %792  ;;  %615 = vst [vmem:[%s964_s3] sm:$0xff] %v614_v20   ;;  %v450_v9 = vmul.f32 %v791_v31, %v902_v48 }
 0x110   :  { %v795_v26 = vpop.eup %794  ;;  %654 = vst [vmem:[%s964_s3 + $0x20] sm:$0xff] %v634_v25   ;;  %v458_v12 = vmul.f32 %v793_v32, %v904_v49 }
 0x111   :  { %v797_v36 = vpop.eup %796  ;;  %v453_v4 = vmul.f32 %v795_v26, %v909_v55 }
 0x112   :  { %v799_v5 = vpop.eup %798  ;;  %v461_v7 = vmul.f32 %v797_v36, %v911_v56 }
 0x113   :  { %v801_v8 = vpop.eup %800  ;;  %v629_v10 = vpack.c.bf16 %v453_v4, %v452_v37  ;;  %v451_v11 = vmul.f32 %v799_v5, %v914_v60 }
 0x114   :  { %v649_v13 = vpack.c.bf16 %v461_v7, %v460_v6  ;;  %v459_v14 = vmul.f32 %v801_v8, %v916_v61 }
 0x115   :  { %653 = vst [vmem:[%s964_s3 + $0x18] sm:$0xff] %v629_v10   ;;  %v624_v43 = vpack.c.bf16 %v451_v11, %v450_v9 }
 0x116   :  { %657 = vst [vmem:[%s964_s3 + $0x38] sm:$0xff] %v649_v13   ;;  %v644_v44 = vpack.c.bf16 %v459_v14, %v458_v12 }
 0x117   :  { %652 = vst [vmem:[%s964_s3 + $0x10] sm:$0xff] %v624_v43  }
 0x118   :  { %656 = vst [vmem:[%s964_s3 + $0x30] sm:$0xff] %v644_v44  }

// kernel: detect_backend_forward.4
= control target key start
LH: loop header
LB: loop body
LE: loop exit
PB: predicated region body
PF: predicated region fallthrough
CT: control target
= control target key end

     0   :  { %s714_s1 = inlined_call_operand.vmem [shape: bf16[384,128], index: 1, kind: input, shape index: {}]   ;;  %s715_s0 = inlined_call_operand.vmem [shape: bf16[32,384], index: 0, kind: input, shape index: {}]   ;;  %s716_s2 = inlined_call_operand.vmem [shape: f32[1,128], index: 2, kind: input, shape index: {}]   ;;  %s717_s3 = inlined_call_operand.vmem [shape: bf16[32,128], index: 3, kind: output, shape index: {}]  }
   0x1   :  { %v547_v0 = vld [vmem:[%s714_s1 + $0x78] sm:$0xff]   ;;  %v550_v3 = vld [vmem:[%s714_s1 + $0x70] sm:$0xff]   ;;  %v553_v6 = vld [vmem:[%s714_s1 + $0x68] sm:$0xff]  }
   0x2   :  { %v548_v1 = vld [vmem:[%s714_s1 + $0x38] sm:$0xff]   ;;  %489 = vmatprep.subr.bf16.mxu0 %v547_v0  ;;  %v551_v4 = vld [vmem:[%s714_s1 + $0x30] sm:$0xff]   ;;  %v554_v7 = vld [vmem:[%s714_s1 + $0x28] sm:$0xff]  }
   0x3   :  { %v549_v2 = vld [vmem:[%s714_s1 + $0xb8] sm:$0xff]   ;;  %490 = vmatpush3.bf16.msra.mxu0 %v548_v1  ;;  %v552_v5 = vld [vmem:[%s714_s1 + $0xb0] sm:$0xff]   ;;  %v555_v8 = vld [vmem:[%s714_s1 + $0xa8] sm:$0xff]  }
   0x4   :  { %527 = vmatprep.subr.bf16.mxu1 %v549_v2  ;;  %491 = vmatprep.subr.bf16.mxu0 %v550_v3  ;;  %v556_v9 = vld [vmem:[%s714_s1 + $0x60] sm:$0xff]   ;;  %v559_v12 = vld [vmem:[%s714_s1 + $0x58] sm:$0xff]   ;;  %v562_v15 = vld [vmem:[%s714_s1 + $0x50] sm:$0xff]  }
   0x5   :  { %528 = vmatpush3.bf16.msra.mxu1 %v549_v2  ;;  %v557_v10 = vld [vmem:[%s714_s1 + $0x20] sm:$0xff]   ;;  %v561_v13 = vld [vmem:[%s714_s1 + $0x98] sm:$0xff]   ;;  %v564_v16 = vld [vmem:[%s714_s1 + $0x90] sm:$0xff]  }
   0x6   :  { %529 = vmatprep.subr.bf16.mxu1 %v552_v5  ;;  %v558_v11 = vld [vmem:[%s714_s1 + $0xa0] sm:$0xff]   ;;  %v560_v14 = vld [vmem:[%s714_s1 + $0x18] sm:$0xff]   ;;  %v563_v17 = vld [vmem:[%s714_s1 + $0x10] sm:$0xff]  }
   0x7   :  { %492 = vmatpush3.bf16.msra.mxu0 %v551_v4  ;;  %v565_v18 = vld [vmem:[%s714_s1 + $0x48] sm:$0xff]   ;;  %v568_v21 = vld [vmem:[%s714_s1 + $0x40] sm:$0xff]  }
   0x8   :  { %493 = vmatprep.subr.bf16.mxu0 %v553_v6  ;;  %v566_v19 = vld [vmem:[%s714_s1 + $0x8] sm:$0xff]   ;;  %v570_v22 = vld [vmem:[%s714_s1 + $0x80] sm:$0xff]  }
   0x9   :  { %530 = vmatpush3.bf16.msra.mxu1 %v552_v5  ;;  %v567_v20 = vld [vmem:[%s714_s1 + $0x88] sm:$0xff]   ;;  %v573_v23 = vld [vmem:[%s715_s0 + $0x4] ss:$12 sps:$4 sm:$0xff]   ;;  %v465_v36 = vld [vmem:[%s716_s2] ss:$0 sm:$0xff] }
   0xa   :  { %531 = vmatprep.subr.bf16.mxu1 %v555_v8  ;;  %v574_v24 = vld [vmem:[%s715_s0 + $0x8] ss:$12 sps:$4 sm:$0xff]   ;;  %v569_v25 = vld [vmem:[%s714_s1] sm:$0xff]   ;;  %291 = vmatprep.mubr.bf16.mxu0 %v573_v23 }
   0xb   :  { %494 = vmatpush3.bf16.msra.mxu0 %v554_v7  ;;  %543 = vmatprep.mubr.bf16.mxu1 %v574_v24  ;;  %v571_v26 = vld [vmem:[%s715_s0] ss:$12 sps:$4 sm:$0xff]   ;;  %v576_v27 = vld [vmem:[%s715_s0 + $0x1c] ss:$12 sps:$4 sm:$0xff]   ;;  %v578_v29 = vld [vmem:[%s715_s0 + $0x18] ss:$12 sps:$4 sm:$0xff]  }
   0xc   :  { %495 = vmatprep.subr.bf16.mxu0 %v556_v9  ;;  %v575_v28 = vld [vmem:[%s715_s0 + $0x20] ss:$12 sps:$4 sm:$0xff]  }
   0xd   :  { %532 = vmatpush3.bf16.msra.mxu1 %v555_v8 }
   0xe   :  { %533 = vmatprep.subr.bf16.mxu1 %v558_v11 }
   0xf   :  { %496 = vmatpush3.bf16.msra.mxu0 %v557_v10 }
  0x10   :  { %497 = vmatprep.subr.bf16.mxu0 %v559_v12 }
  0x11   :  { %534 = vmatpush3.bf16.msra.mxu1 %v558_v11 }
  0x12   :  { %535 = vmatprep.subr.bf16.mxu1 %v561_v13 }
  0x13   :  { %498 = vmatpush3.bf16.msra.mxu0 %v560_v14 }
  0x14   :  { %499 = vmatprep.subr.bf16.mxu0 %v562_v15 }
  0x15   :  { %536 = vmatpush3.bf16.msra.mxu1 %v561_v13 }
  0x16   :  { %537 = vmatprep.subr.bf16.mxu1 %v564_v16 }
  0x17   :  { %500 = vmatpush3.bf16.msra.mxu0 %v563_v17 }
  0x18   :  { %501 = vmatprep.subr.bf16.mxu0 %v565_v18 }
  0x19   :  { %538 = vmatpush3.bf16.msra.mxu1 %v564_v16 }
  0x1a   :  { %539 = vmatprep.subr.bf16.mxu1 %v567_v20 }
  0x1b   :  { %502 = vmatpush3.bf16.msra.mxu0 %v566_v19 }
  0x1c   :  { %503 = vmatprep.subr.bf16.mxu0 %v568_v21 }
  0x1d   :  { %540 = vmatpush3.bf16.msra.mxu1 %v567_v20 }
  0x1e   :  { %541 = vmatprep.subr.bf16.mxu1 %v570_v22 }
  0x1f   :  { %504 = vmatpush3.bf16.msra.mxu0 %v569_v25 }
  0x21   :  { %542 = vmatpush3.bf16.msra.mxu1 %v570_v22 }
  0x22   :  { %292 = vmatmul.mubr.bf16.vlgmr.msra.gmra.mxu0 %v571_v26 }
  0x23   :  { %299 = vmatprep.mubr.bf16.mxu0 %v576_v27 }
  0x24   :  { %544 = vmatmul.mubr.bf16.vlgmr.msra.gmra.mxu1 %v575_v28 }
  0x2a   :  { %300 = vmatmul.mubr.bf16.gmra.mxu0 %v578_v29 }
  0xe2   :  { %v505_v30 = vpop.f32.mrf.mxu0 }
  0xe4   :  { %v506_v31 = vpop.f32.mrf.mxu0  ;;  %v545_v32 = vpop.f32.mrf.mxu1 }
  0xe5   :  { %v507_v33 = vadd.f32 %v506_v31, %v505_v30 }
  0xe6   :  { %v508_v34 = vpop.f32.mrf.mxu0  ;;  %v342_v35 = vpop.f32.mrf.mxu1 }
  0xe7   :  { %v343_v37 = vadd.f32 %v507_v33, %v342_v35 }
  0xe8   :  { %v509_v38 = vpop.f32.mrf.mxu0  ;;  %v546_v39 = vpop.f32.mrf.mxu1 }
  0xe9   :  { %v379_v40 = vadd.f32 %v465_v36, %v343_v37  ;;  %v510_v41 = vadd.f32 %v509_v38, %v508_v34 }
  0xea   :  { %v511_v42 = vpop.f32.mrf.mxu0  ;;  %v345_v43 = vpop.f32.mrf.mxu1 }
  0xeb   :  { %v466_v44 = vmul.f32 -1.442695, %v379_v40  ;;  %v346_v45 = vadd.f32 %v510_v41, %v345_v43 }
  0xec   :  { %v512_v46 = vpop.f32.mrf.mxu0 }
  0xed   :  { %579 = vpow2.f32 %v466_v44  ;;  %v380_v47 = vadd.f32 %v465_v36, %v346_v45  ;;  %v513_v48 = vadd.f32 %v512_v46, %v511_v42 }
  0xee   :  { %v514_v49 = vpop.f32.mrf.mxu0 }
  0xef   :  { %v467_v50 = vmul.f32 -1.442695, %v380_v47  ;;  %v351_v51 = vadd.f32 %v545_v32, %v513_v48 }
  0xf0   :  { %v515_v52 = vpop.f32.mrf.mxu0 }
  0xf1   :  { %581 = vpow2.f32 %v467_v50  ;;  %v381_v53 = vadd.f32 %v465_v36, %v351_v51  ;;  %v516_v54 = vadd.f32 %v515_v52, %v514_v49 }
  0xf3   :  { %v468_v55 = vmul.f32 -1.442695, %v381_v53  ;;  %v354_v56 = vadd.f32 %v546_v39, %v516_v54 }
  0xf5   :  { %583 = vpow2.f32 %v468_v55  ;;  %v382_v57 = vadd.f32 %v465_v36, %v354_v56 }
  0xf7   :  { %v469_v58 = vmul.f32 -1.442695, %v382_v57 }
  0xf9   :  { %585 = vpow2.f32 %v469_v58 }
  0xfa   :  { %v580_v59 = vpop.eup %579 }
  0xfb   :  { %v395_v60 = vadd.f32 1.0, %v580_v59 }
  0xfd   :  { %587 = vrcp.f32 %v395_v60 }
  0xfe   :  { %v582_v61 = vpop.eup %581 }
  0xff   :  { %v396_v62 = vadd.f32 1.0, %v582_v61 }
 0x101   :  { %589 = vrcp.f32 %v396_v62 }
 0x102   :  { %v584_v63 = vpop.eup %583 }
 0x103   :  { %v397_v0 = vadd.f32 1.0, %v584_v63 }
 0x105   :  { %591 = vrcp.f32 %v397_v0 }
 0x106   :  { %v586_v1 = vpop.eup %585 }
 0x107   :  { %v398_v2 = vadd.f32 1.0, %v586_v1 }
 0x109   :  { %593 = vrcp.f32 %v398_v2 }
 0x10a   :  { %v588_v3 = vpop.eup %587 }
 0x10b   :  { %v407_v5 = vmul.f32 %v588_v3, %v379_v40 }
 0x10e   :  { %v590_v4 = vpop.eup %589 }
 0x10f   :  { %v408_v6 = vmul.f32 %v590_v4, %v380_v47 }
 0x111   :  { %v481_v7 = vpack.c.bf16 %v408_v6, %v407_v5 }
 0x112   :  { %v592_v8 = vpop.eup %591 }
 0x113   :  { %482 = vst [vmem:[%s717_s3] sm:$0xff] %v481_v7   ;;  %v409_v10 = vmul.f32 %v592_v8, %v381_v53 }
 0x116   :  { %v594_v9 = vpop.eup %593 }
 0x117   :  { %v410_v11 = vmul.f32 %v594_v9, %v382_v57 }
 0x119   :  { %v486_v12 = vpack.c.bf16 %v410_v11, %v409_v10 }
 0x11b   :  { %488 = vst [vmem:[%s717_s3 + $0x8] sm:$0xff] %v486_v12  }

// kernel: detect_backend_forward.5
= control target key start
LH: loop header
LB: loop body
LE: loop exit
PB: predicated region body
PF: predicated region fallthrough
CT: control target
= control target key end

     0   :  { %v207_v22 = vlaneseq  ;;  %s473_s1 = inlined_call_operand.vmem [shape: bf16[128,128], index: 1, kind: input, shape index: {}]   ;;  %s474_s0 = inlined_call_operand.vmem [shape: bf16[32,128], index: 0, kind: input, shape index: {}]   ;;  %s475_s2 = inlined_call_operand.vmem [shape: f32[1,128], index: 2, kind: input, shape index: {}]   ;;  %s476_s3 = inlined_call_operand.vmem [shape: f32[32,128], index: 3, kind: output, shape index: {}]  }
   0x1   :  { %v344_v0 = vld [vmem:[%s473_s1 + $0x38] sm:$0xff]   ;;  %v345_v1 = vld [vmem:[%s473_s1 + $0x30] sm:$0xff]   ;;  %v346_v2 = vld [vmem:[%s473_s1 + $0x28] sm:$0xff]  }
   0x2   :  { %324 = vmatprep.subr.bf16.mxu0 %v344_v0  ;;  %v347_v3 = vld [vmem:[%s473_s1 + $0x20] sm:$0xff]   ;;  %v348_v5 = vld [vmem:[%s473_s1 + $0x18] sm:$0xff]   ;;  %v349_v6 = vld [vmem:[%s473_s1 + $0x10] sm:$0xff]   ;;  %v208_v24 = vshrl.u32 %v207_v22, 7  ;;  %v423_v40 = vand.u32 127, %v207_v22 }
   0x3   :  { %325 = vmatpush3.bf16.msra.mxu0 %v344_v0  ;;  %v352_v4 = vld [vmem:[%s474_s0] sm:$0xff]   ;;  %v350_v7 = vld [vmem:[%s473_s1 + $0x8] sm:$0xff]  }
   0x4   :  { %326 = vmatprep.subr.bf16.mxu0 %v345_v1  ;;  %340 = vmatprep.mubr.bf16.mxu0 %v352_v4  ;;  %v351_v8 = vld [vmem:[%s473_s1] sm:$0xff]   ;;  %v353_v9 = vld [vmem:[%s474_s0 + $0x8] sm:$0xff]   ;;  %v210_v25 = vadd.s32 16, %v208_v24  ;;  %v211_v29 = vadd.s32 24, %v208_v24  ;;  %v217_v33 = vand.u32 15, %v208_v24  ;;  %v209_v37 = vadd.s32 8, %v208_v24 }
   0x5   :  { %v305_v10 = vld [vmem:[%s475_s2] ss:$0 sm:$0xff]  ;;  %vm240_vm0 = vcmp.eq.s32.totalorder %v423_v40, 1  ;;  %vm239_vm1 = vcmp.eq.s32.totalorder %v423_v40, 0  ;;  %vm277_vm2 = vcmp.lt.s32.totalorder %v423_v40, 2  ;;  %vm278_vm3 = vcmp.lt.s32.totalorder %v423_v40, 4 }
   0x6   :  { %v219_v30 = vand.u32 15, %v210_v25  ;;  %v220_v36 = vand.u32 15, %v211_v29  ;;  %v229_v41 = vshra.s32 %v217_v33, 2  ;;  %v218_v44 = vand.u32 15, %v209_v37 }
   0x7   :  { %327 = vmatpush3.bf16.msra.mxu0 %v345_v1  ;;  %v221_v46 = vand.u32 3, %v217_v33 }
   0x8   :  { %328 = vmatprep.subr.bf16.mxu0 %v346_v2  ;;  %v231_v38 = vshra.s32 %v219_v30, 2  ;;  %v223_v42 = vand.u32 3, %v219_v30  ;;  %v232_v43 = vshra.s32 %v220_v36, 2  ;;  %v233_v47 = vcvt.s32.f32 %v229_v41 }
   0x9   :  { %v224_v49 = vand.u32 3, %v220_v36  ;;  %v230_v51 = vshra.s32 %v218_v44, 2  ;;  %v225_v54 = vcvt.s32.f32 %v221_v46  ;;  %v222_v55 = vand.u32 3, %v218_v44 }
   0xa   :  { %v235_v45 = vcvt.s32.f32 %v231_v38  ;;  %v227_v48 = vcvt.s32.f32 %v223_v42  ;;  %v236_v50 = vcvt.s32.f32 %v232_v43  ;;  %v241_v58 = vsel %vm240_vm0, %v233_v47, 0.0 }
   0xb   :  { %329 = vmatpush3.bf16.msra.mxu0 %v346_v2  ;;  %v228_v61 = vcvt.s32.f32 %v224_v49  ;;  %v234_v63 = vcvt.s32.f32 %v230_v51 }
   0xc   :  { %330 = vmatprep.subr.bf16.mxu0 %v347_v3  ;;  %v243_v52 = vsel %vm240_vm0, %v235_v45, 0.0  ;;  %v244_v62 = vsel %vm240_vm0, %v236_v50, 0.0 }
   0xd   :  { %v247_v60 = vsel %vm239_vm1, %v227_v48, %v243_v52 }
   0xf   :  { %331 = vmatpush3.bf16.msra.mxu0 %v347_v3 }
  0x10   :  { %332 = vmatprep.subr.bf16.mxu0 %v348_v5 }
  0x13   :  { %333 = vmatpush3.bf16.msra.mxu0 %v348_v5  ;;  %v245_v5 = vsel %vm239_vm1, %v225_v54, %v241_v58 }
  0x14   :  { %334 = vmatprep.subr.bf16.mxu0 %v349_v6 }
  0x17   :  { %335 = vmatpush3.bf16.msra.mxu0 %v349_v6  ;;  %v226_v6 = vcvt.s32.f32 %v222_v55 }
  0x18   :  { %336 = vmatprep.subr.bf16.mxu0 %v350_v7 }
  0x1b   :  { %337 = vmatpush3.bf16.msra.mxu0 %v350_v7 }
  0x1c   :  { %338 = vmatprep.subr.bf16.mxu0 %v351_v8 }
  0x1f   :  { %339 = vmatpush3.bf16.msra.mxu0 %v351_v8 }
  0x22   :  { %341 = vmatmul.mubr.bf16.vlgmr.msra.gmra.mxu0 %v353_v9 }
  0xe2   :  { %v342_v11 = vpop.f32.mrf.mxu0 }
  0xe3   :  { %v181_v12 = vadd.f32 %v342_v11, %v305_v10 }
  0xe4   :  { %v142_v13 = vpop.f32.mrf.mxu0 }
  0xe5   :  { %v308_v14 = vmul.f32 -1.442695, %v181_v12  ;;  %v179_v15 = vadd.f32 %v305_v10, %v142_v13  ;;  %v248_v12 = vsel %vm239_vm1, %v228_v61, %v244_v62 }
  0xe6   :  { %v343_v16 = vpop.f32.mrf.mxu0 }
  0xe7   :  { %354 = vpow2.f32 %v308_v14  ;;  %v306_v17 = vmul.f32 -1.442695, %v179_v15  ;;  %v182_v18 = vadd.f32 %v343_v16, %v305_v10  ;;  %v242_v15 = vsel %vm240_vm0, %v234_v63, 0.0 }
  0xe8   :  { %v145_v19 = vpop.f32.mrf.mxu0 }
  0xe9   :  { %356 = vpow2.f32 %v306_v17  ;;  %v309_v20 = vmul.f32 -1.442695, %v182_v18  ;;  %v180_v21 = vadd.f32 %v305_v10, %v145_v19 }
  0xeb   :  { %358 = vpow2.f32 %v309_v20  ;;  %v307_v23 = vmul.f32 -1.442695, %v180_v21 }
  0xed   :  { %360 = vpow2.f32 %v307_v23 }
  0xf4   :  { %v355_v26 = vpop.eup %354 }
  0xf5   :  { %v197_v27 = vadd.f32 1.0, %v355_v26 }
  0xf6   :  { %v357_v28 = vpop.eup %356 }
  0xf7   :  { %362 = vrcp.f32 %v197_v27  ;;  %v195_v31 = vadd.f32 1.0, %v357_v28  ;;  %v246_v27 = vsel %vm239_vm1, %v226_v6, %v242_v15 }
  0xf8   :  { %v359_v32 = vpop.eup %358 }
  0xf9   :  { %364 = vrcp.f32 %v195_v31  ;;  %v198_v34 = vadd.f32 1.0, %v359_v32 }
  0xfa   :  { %v361_v35 = vpop.eup %360 }
  0xfb   :  { %366 = vrcp.f32 %v198_v34  ;;  %v196_v39 = vadd.f32 1.0, %v361_v35 }
  0xfd   :  { %368 = vrcp.f32 %v196_v39 }
 0x104   :  { %v363_v53 = vpop.eup %362 }
 0x105   :  { %v251_v56 = vmul.f32 2.0, %v363_v53  ;;  %v267_v57 = vmul.f32 4.0, %v363_v53 }
 0x106   :  { %v365_v59 = vpop.eup %364 }
 0x107   :  { %v312_v0 = vadd.f32 -0.5, %v251_v56  ;;  %v271_v1 = vmul.f32 %v363_v53, %v267_v57  ;;  %v249_v2 = vmul.f32 2.0, %v365_v59  ;;  %v265_v3 = vmul.f32 4.0, %v365_v59 }
 0x108   :  { %v367_v4 = vpop.eup %366 }
 0x109   :  { %v259_v7 = vadd.f32 %v312_v0, %v247_v60  ;;  %v275_v8 = vmul.f32 4.0, %v271_v1  ;;  %v310_v9 = vadd.f32 -0.5, %v249_v2  ;;  %v269_v10 = vmul.f32 %v365_v59, %v265_v3 }
 0x10a   :  { %v369_v11 = vpop.eup %368  ;;  %v252_v13 = vmul.f32 2.0, %v367_v4  ;;  %v268_v14 = vmul.f32 4.0, %v367_v4 }
 0x10b   :  { %v263_v16 = vmul.f32 4.0, %v259_v7  ;;  %v281_v17 = vsel %vm278_vm3, %v275_v8, %v363_v53  ;;  %v257_v18 = vadd.f32 %v310_v9, %v245_v5  ;;  %v273_v19 = vmul.f32 4.0, %v269_v10 }
 0x10c   :  { %v313_v20 = vadd.f32 -0.5, %v252_v13  ;;  %v272_v21 = vmul.f32 %v367_v4, %v268_v14  ;;  %v250_v22 = vmul.f32 2.0, %v369_v11  ;;  %v266_v23 = vmul.f32 4.0, %v369_v11 }
 0x10d   :  { %v285_v24 = vsel %vm277_vm2, %v263_v16, %v281_v17  ;;  %v261_v25 = vmul.f32 4.0, %v257_v18  ;;  %v279_v26 = vsel %vm278_vm3, %v273_v19, %v365_v59 }
 0x10e   :  { %289 = vst [vmem:[%s476_s3 + $0x10] sm:$0xff] %v285_v24  ;;  %v260_v28 = vadd.f32 %v313_v20, %v248_v12  ;;  %v276_v29 = vmul.f32 4.0, %v272_v21  ;;  %v311_v30 = vadd.f32 -0.5, %v250_v22  ;;  %v270_v31 = vmul.f32 %v369_v11, %v266_v23 }
 0x10f   :  { %v283_v32 = vsel %vm277_vm2, %v261_v25, %v279_v26 }
 0x110   :  { %287 = vst [vmem:[%s476_s3] sm:$0xff] %v283_v32  ;;  %v264_v33 = vmul.f32 4.0, %v260_v28  ;;  %v282_v34 = vsel %vm278_vm3, %v276_v29, %v367_v4  ;;  %v258_v35 = vadd.f32 %v311_v30, %v246_v27  ;;  %v274_v36 = vmul.f32 4.0, %v270_v31 }
 0x112   :  { %v286_v37 = vsel %vm277_vm2, %v264_v33, %v282_v34  ;;  %v262_v38 = vmul.f32 4.0, %v258_v35  ;;  %v280_v39 = vsel %vm278_vm3, %v274_v36, %v369_v11 }
 0x113   :  { %290 = vst [vmem:[%s476_s3 + $0x18] sm:$0xff] %v286_v37 }
 0x114   :  { %v284_v41 = vsel %vm277_vm2, %v262_v38, %v280_v39 }
 0x115   :  { %288 = vst [vmem:[%s476_s3 + $0x8] sm:$0xff] %v284_v41 }

</bundles_post_ra>
